<compile_context>
chip_gen: v5e
topology: v5e:2x2
jax: 0.10.0
libtpu: 0.0.40
codegen_flags: <defaults>
</compile_context>

<pallas_src>
import functools

import jax
import jax.numpy as jnp
from jax import lax
from jax.experimental import pallas as pl
from jax.experimental.pallas import tpu as pltpu

_HALF_LOG_2PI = 0.9189385332046727  # 0.5 * log(2*pi)


def _lowerbound_kernel(x_ref, eps_ref,
                       wctx_ref, bctx_ref,
                       wmuls_ref, bmuls_ref,
                       sel_ref, pvm_ref, pvls_ref,
                       out_ref, *, ng, gc, hw):
    # ---- sample-invariant operands, loaded once per grid step --------------
    wctx = wctx_ref[...]                 # (G*CTX, G*C)   block-diagonal
    bctx = bctx_ref[...]                 # (G*CTX, 1)
    wmuls = wmuls_ref[...]               # (2*G*C, G*CTX) [mu rows ; log_s rows]
    bmuls = bmuls_ref[...]               # (2*G*C, 1)
    sel = sel_ref[...]                   # (G, G*C)       per-sample channel-sum
    pvm = pvm_ref[...]                   # (G*C, 1)
    inv_pvs = jnp.exp(-pvls_ref[...])    # (G*C, 1)
    n_chunks = hw // 128

    def body(gi, carry):
        xg = x_ref[gi]                   # (G*C, HW)  G samples packed on sublanes
        eg = eps_ref[gi]                 # (G*C, HW)

        # model_context: block-diag 1x1 conv + tanh -> (G*CTX, HW)
        ctx = jnp.tanh(
            jnp.dot(wctx, xg, preferred_element_type=jnp.float32) + bctx)

        # model_qu_x: fused (mu || log_s) block-diag projection -> (2*G*C, HW)
        muls = jnp.dot(wmuls, ctx, preferred_element_type=jnp.float32) + bmuls
        mu = muls[:gc]                   # (G*C, HW), aligned with xg layout
        log_s = muls[gc:]                # (G*C, HW)

        # reparameterized u, v = x + u, z-score under factorized p(v)
        u = mu + jnp.exp(log_s) * eg
        z = (xg + u - pvm) * inv_pvs

        # per-element log_pv - log_qu; 0.5*log(2*pi) cancels exactly and the
        # constant -HW*sum(pv_log_scale) is added back in the wrapper.
        contrib = 0.5 * (eg * eg - z * z) + log_s            # (G*C, HW)

        # per-sample channel reduction on the MXU -> (G, HW)
        per_sample = jnp.dot(sel, contrib, preferred_element_type=jnp.float32)

        # fold HW lanes into 128 partial lanes (final lane reduce in wrapper)
        acc = per_sample[:, 0:128]
        for k in range(1, n_chunks):
            acc = acc + per_sample[:, k * 128:(k + 1) * 128]

        out_ref[gi] = acc                # one dense, unmasked (G, 128) store
        return carry

    lax.fori_loop(0, ng, body, 0, unroll=2 if ng >= 2 else 1)


def discrete_lowerbound(x_nchw, eps_nchw, params, *,
                        group=8, target_block_batch=512):
    """x_nchw, eps_nchw: (B, C, H, W) float32. Returns log_pv - log_qu, (B,)."""
    B, C, H, W = x_nchw.shape
    HW = H * W
    assert HW % 128 == 0, "H*W must be a multiple of the 128-lane width"
    CTX = params["w_ctx_t"].shape[0]
    G = group                            # 8 -> G*CTX = 256 matches v6e/v7x MXU
    GC, GCTX = G * C, G * CTX

    # ---- grid sizing: pack samples into groups of G, groups into steps -----
    n_groups = -(-B // G)
    ng_target = max(1, target_block_batch // G)
    if n_groups >= 2:
        ng = max(1, min(ng_target, n_groups // 2))   # >=2 grid steps (v7x 2 TCs)
    else:
        ng = 1
    n_steps = -(-n_groups // ng)
    total_groups = n_steps * ng
    B_pad = total_groups * G

    # NCHW -> (B, C, HW) -> pad -> (groups, G*C, HW): free reshapes, no transpose.
    x_flat = x_nchw.astype(jnp.float32).reshape(B, C, HW)
    eps_flat = eps_nchw.astype(jnp.float32).reshape(B, C, HW)
    if B_pad != B:
        pad = ((0, B_pad - B), (0, 0), (0, 0))
        x_flat = jnp.pad(x_flat, pad)
        eps_flat = jnp.pad(eps_flat, pad)
    x_packed = x_flat.reshape(total_groups, GC, HW)
    eps_packed = eps_flat.reshape(total_groups, GC, HW)

    # ---- block-diagonal weights + selector (built once, tiny) --------------
    eye_g = jnp.eye(G, dtype=jnp.float32)
    w_mu = params["w_muls_t"][:C]        # (C, CTX)
    w_ls = params["w_muls_t"][C:]
    b_mu = params["b_muls"][:C]
    b_ls = params["b_muls"][C:]
    wctx_bd = jnp.kron(eye_g, params["w_ctx_t"])                   # (G*CTX, G*C)
    bctx_bd = jnp.tile(params["b_ctx"], (G, 1))                    # (G*CTX, 1)
    wmuls_bd = jnp.concatenate([jnp.kron(eye_g, w_mu),
                                jnp.kron(eye_g, w_ls)], axis=0)    # (2*G*C, G*CTX)
    bmuls_bd = jnp.concatenate([jnp.tile(b_mu, (G, 1)),
                                jnp.tile(b_ls, (G, 1))], axis=0)   # (2*G*C, 1)
    sel = jnp.kron(eye_g, jnp.ones((1, C), jnp.float32))           # (G, G*C)
    pvm_bd = jnp.tile(params["pv_mean"], (G, 1))                   # (G*C, 1)
    pvls_bd = jnp.tile(params["pv_log_scale"], (G, 1))             # (G*C, 1)

    def full(shape):
        return pl.BlockSpec(shape, lambda i: (0,) * len(shape))

    kernel = functools.partial(_lowerbound_kernel, ng=ng, gc=GC, hw=HW)

    out = pl.pallas_call(
        kernel,
        out_shape=jax.ShapeDtypeStruct((total_groups, G, 128), jnp.float32),
        grid_spec=pltpu.PrefetchScalarGridSpec(
            num_scalar_prefetch=0,
            grid=(n_steps,),
            in_specs=[
                pl.BlockSpec((ng, GC, HW), lambda i: (i, 0, 0)),   # x packed
                pl.BlockSpec((ng, GC, HW), lambda i: (i, 0, 0)),   # eps packed
                full((GCTX, GC)),        # w_ctx block-diag
                full((GCTX, 1)),         # b_ctx tiled
                full((2 * GC, GCTX)),    # w_mu||w_ls block-diag
                full((2 * GC, 1)),       # b_mu||b_ls tiled
                full((G, GC)),           # channel-sum selector
                full((GC, 1)),           # pv_mean tiled
                full((GC, 1)),           # pv_log_scale tiled
            ],
            out_specs=pl.BlockSpec((ng, G, 128), lambda i: (i, 0, 0)),
        ),
        compiler_params=pltpu.CompilerParams(
            dimension_semantics=("parallel",),
            vmem_limit_bytes=32 * 1024 * 1024,
        ),
    )(x_packed, eps_packed, wctx_bd, bctx_bd, wmuls_bd, bmuls_bd,
      sel, pvm_bd, pvls_bd)

    # Final cheap reductions in the wrapper (per perf review): sum 128 partial
    # lanes and add the analytically-hoisted constant term.
    partial = out.reshape(B_pad, 128)[:B]                          # (B, 128)
    pv_ls_total = HW * jnp.sum(params["pv_log_scale"])
    return jnp.sum(partial, axis=-1) - pv_ls_total


def init_params(key, C, CTX):
    ks = jax.random.split(key, 7)
    scale = 0.05
    w_mu = scale * jax.random.normal(ks[1], (C, CTX), jnp.float32)
    w_ls = scale * jax.random.normal(ks[2], (C, CTX), jnp.float32)
    return {
        "w_ctx_t": scale * jax.random.normal(ks[0], (CTX, C), jnp.float32),
        "b_ctx": 0.1 * jax.random.normal(ks[5], (CTX, 1), jnp.float32),
        "w_muls_t": jnp.concatenate([w_mu, w_ls], axis=0),   # (2C, CTX)
        "b_muls": 0.1 * jax.random.normal(ks[6], (2 * C, 1), jnp.float32),
        "pv_mean": scale * jax.random.normal(ks[3], (C, 1), jnp.float32),
        "pv_log_scale": 0.1 * jax.random.normal(ks[4], (C, 1), jnp.float32),
    }


def reference_lowerbound(x_nchw, eps_nchw, params):
    """Pure-JAX reference of the same forward pass (for validation)."""
    B, C, H, W = x_nchw.shape
    HW = H * W
    x = x_nchw.astype(jnp.float32).reshape(B, C, HW)
    eps = eps_nchw.astype(jnp.float32).reshape(B, C, HW)
    wctx, bctx = params["w_ctx_t"], params["b_ctx"]
    wmuls, bmuls = params["w_muls_t"], params["b_muls"]
    pvm, pvls = params["pv_mean"], params["pv_log_scale"]

    ctx = jnp.tanh(jnp.einsum("kc,bcp->bkp", wctx, x) + bctx[None])
    muls = jnp.einsum("mk,bkp->bmp", wmuls, ctx) + bmuls[None]
    mu, log_s = muls[:, :C], muls[:, C:]
    u = mu + jnp.exp(log_s) * eps
    log_qu = jnp.sum(-0.5 * eps * eps - _HALF_LOG_2PI - log_s, axis=(1, 2))
    v = x + u
    z = (v - pvm[None]) * jnp.exp(-pvls[None])
    log_pv = jnp.sum(-0.5 * z * z - _HALF_LOG_2PI - pvls[None], axis=(1, 2))
    return log_pv - log_qu


if __name__ == "__main__":
    B, C, H, W = 2, 4, 16, 16
    CTX = 32

    key = jax.random.PRNGKey(0)
    k_x, k_eps, k_p = jax.random.split(key, 3)

    x = jax.random.normal(k_x, (B, C, H, W), jnp.float32)
    # Reparameterization noise for model_qu_x.sample (one draw per element).
    eps = jax.random.normal(k_eps, (B, C, H, W), jnp.float32)
    params = init_params(k_p, C, CTX)

    lb = discrete_lowerbound(x, eps, params)
    jax.block_until_ready(lb)
    assert lb.shape == (B,)

    ref = reference_lowerbound(x, eps, params)
    # Tightened f32 baseline check (per review) — keep f32 inputs for now.
    assert jnp.allclose(lb, ref, rtol=2e-3, atol=1e-1), (lb, ref)
    print("KERNEL_OK")
</pallas_src>

<mosaic_0001>
module attributes {stable_mosaic.version = 11 : i64} {
  func.func @_lowerbound_kernel(%arg0: i32, %arg1: memref<1x32x256xf32, #tpu.memory_space<vmem>>, %arg2: memref<1x32x256xf32, #tpu.memory_space<vmem>>, %arg3: memref<256x32xf32, #tpu.memory_space<vmem>>, %arg4: memref<256x1xf32, #tpu.memory_space<vmem>>, %arg5: memref<64x256xf32, #tpu.memory_space<vmem>>, %arg6: memref<64x1xf32, #tpu.memory_space<vmem>>, %arg7: memref<8x32xf32, #tpu.memory_space<vmem>>, %arg8: memref<32x1xf32, #tpu.memory_space<vmem>>, %arg9: memref<32x1xf32, #tpu.memory_space<vmem>>, %arg10: memref<1x8x128xf32, #tpu.memory_space<vmem>>) attributes {dimension_semantics = [#tpu.dimension_semantics<parallel>], iteration_bounds = array<i64: 1>, scalar_prefetch = 0 : i64, scratch_operands = 0 : i64, tpu.core_type = #tpu.core_type<tc>, window_params = [{transform_indices = @transform_0, window_bounds = array<i64: 1, 32, 256>}, {transform_indices = @transform_1, window_bounds = array<i64: 1, 32, 256>}, {pipeline_mode = #tpu.pipeline_mode<synchronous>, transform_indices = @transform_2, window_bounds = array<i64: 256, 32>}, {pipeline_mode = #tpu.pipeline_mode<synchronous>, transform_indices = @transform_3, window_bounds = array<i64: 256, 1>}, {pipeline_mode = #tpu.pipeline_mode<synchronous>, transform_indices = @transform_4, window_bounds = array<i64: 64, 256>}, {pipeline_mode = #tpu.pipeline_mode<synchronous>, transform_indices = @transform_5, window_bounds = array<i64: 64, 1>}, {pipeline_mode = #tpu.pipeline_mode<synchronous>, transform_indices = @transform_6, window_bounds = array<i64: 8, 32>}, {pipeline_mode = #tpu.pipeline_mode<synchronous>, transform_indices = @transform_7, window_bounds = array<i64: 32, 1>}, {pipeline_mode = #tpu.pipeline_mode<synchronous>, transform_indices = @transform_8, window_bounds = array<i64: 32, 1>}, {transform_indices = @transform_9, window_bounds = array<i64: 1, 8, 128>}]} {
    %c0 = arith.constant 0 : index
    %c0_0 = arith.constant 0 : index
    %0 = vector.load %arg3[%c0, %c0_0] : memref<256x32xf32, #tpu.memory_space<vmem>>, vector<256x32xf32>
    %c0_1 = arith.constant 0 : index
    %c0_2 = arith.constant 0 : index
    %1 = vector.load %arg4[%c0_1, %c0_2] : memref<256x1xf32, #tpu.memory_space<vmem>>, vector<256x1xf32>
    %c0_3 = arith.constant 0 : index
    %c0_4 = arith.constant 0 : index
    %2 = vector.load %arg5[%c0_3, %c0_4] : memref<64x256xf32, #tpu.memory_space<vmem>>, vector<64x256xf32>
    %c0_5 = arith.constant 0 : index
    %c0_6 = arith.constant 0 : index
    %3 = vector.load %arg6[%c0_5, %c0_6] : memref<64x1xf32, #tpu.memory_space<vmem>>, vector<64x1xf32>
    %c0_7 = arith.constant 0 : index
    %c0_8 = arith.constant 0 : index
    %4 = vector.load %arg7[%c0_7, %c0_8] : memref<8x32xf32, #tpu.memory_space<vmem>>, vector<8x32xf32>
    %c0_9 = arith.constant 0 : index
    %c0_10 = arith.constant 0 : index
    %5 = vector.load %arg8[%c0_9, %c0_10] : memref<32x1xf32, #tpu.memory_space<vmem>>, vector<32x1xf32>
    %c0_11 = arith.constant 0 : index
    %c0_12 = arith.constant 0 : index
    %6 = vector.load %arg9[%c0_11, %c0_12] : memref<32x1xf32, #tpu.memory_space<vmem>>, vector<32x1xf32>
    %cst = arith.constant 0.000000e+00 : f32
    %7 = vector.broadcast %cst : f32 to vector<32x1xf32>
    %8 = arith.subf %7, %6 : vector<32x1xf32>
    %9 = math.exp %8 : vector<32x1xf32>
    %c0_i32 = arith.constant 0 : i32
    %10 = arith.index_cast %c0_i32 : i32 to index
    %c0_13 = arith.constant 0 : index
    %c0_14 = arith.constant 0 : index
    %11 = vector.load %arg1[%10, %c0_13, %c0_14] : memref<1x32x256xf32, #tpu.memory_space<vmem>>, vector<1x32x256xf32>
    %12 = vector.shape_cast %11 : vector<1x32x256xf32> to vector<32x256xf32>
    %13 = arith.index_cast %c0_i32 : i32 to index
    %c0_15 = arith.constant 0 : index
    %c0_16 = arith.constant 0 : index
    %14 = vector.load %arg2[%13, %c0_15, %c0_16] : memref<1x32x256xf32, #tpu.memory_space<vmem>>, vector<1x32x256xf32>
    %15 = vector.shape_cast %14 : vector<1x32x256xf32> to vector<32x256xf32>
    %cst_17 = arith.constant dense<0.000000e+00> : vector<256x256xf32>
    %16 = tpu.matmul %0, %12, %cst_17 {dimension_numbers = #tpu.dot_dimension_numbers<[1], [0], [0], [1], [0, 0, 1, 1], [], []>} : vector<256x32xf32>, vector<32x256xf32>, vector<256x256xf32> -> vector<256x256xf32>
    %17 = vector.broadcast %1 : vector<256x1xf32> to vector<256x256xf32>
    %18 = arith.addf %16, %17 : vector<256x256xf32>
    %19 = math.tanh %18 : vector<256x256xf32>
    %cst_18 = arith.constant dense<0.000000e+00> : vector<64x256xf32>
    %20 = tpu.matmul %2, %19, %cst_18 {dimension_numbers = #tpu.dot_dimension_numbers<[1], [0], [0], [1], [0, 0, 1, 1], [], []>} : vector<64x256xf32>, vector<256x256xf32>, vector<64x256xf32> -> vector<64x256xf32>
    %21 = vector.broadcast %3 : vector<64x1xf32> to vector<64x256xf32>
    %22 = arith.addf %20, %21 : vector<64x256xf32>
    %23 = vector.extract_strided_slice %22 {offsets = [0, 0], sizes = [32, 256], strides = [1, 1]} : vector<64x256xf32> to vector<32x256xf32>
    %24 = vector.extract_strided_slice %22 {offsets = [32, 0], sizes = [32, 256], strides = [1, 1]} : vector<64x256xf32> to vector<32x256xf32>
    %25 = math.exp %24 : vector<32x256xf32>
    %26 = arith.mulf %25, %15 : vector<32x256xf32>
    %27 = arith.addf %23, %26 : vector<32x256xf32>
    %28 = arith.addf %12, %27 : vector<32x256xf32>
    %29 = vector.broadcast %5 : vector<32x1xf32> to vector<32x256xf32>
    %30 = arith.subf %28, %29 : vector<32x256xf32>
    %31 = vector.broadcast %9 : vector<32x1xf32> to vector<32x256xf32>
    %32 = arith.mulf %30, %31 : vector<32x256xf32>
    %33 = arith.mulf %15, %15 : vector<32x256xf32>
    %34 = arith.mulf %32, %32 : vector<32x256xf32>
    %35 = arith.subf %33, %34 : vector<32x256xf32>
    %cst_19 = arith.constant 5.000000e-01 : f32
    %36 = vector.broadcast %cst_19 : f32 to vector<32x256xf32>
    %37 = arith.mulf %36, %35 : vector<32x256xf32>
    %38 = arith.addf %37, %24 : vector<32x256xf32>
    %cst_20 = arith.constant dense<0.000000e+00> : vector<8x256xf32>
    %39 = tpu.matmul %4, %38, %cst_20 {dimension_numbers = #tpu.dot_dimension_numbers<[1], [0], [0], [1], [0, 0, 1, 1], [], []>} : vector<8x32xf32>, vector<32x256xf32>, vector<8x256xf32> -> vector<8x256xf32>
    %40 = vector.extract_strided_slice %39 {offsets = [0, 0], sizes = [8, 128], strides = [1, 1]} : vector<8x256xf32> to vector<8x128xf32>
    %41 = vector.extract_strided_slice %39 {offsets = [0, 128], sizes = [8, 128], strides = [1, 1]} : vector<8x256xf32> to vector<8x128xf32>
    %42 = arith.addf %40, %41 : vector<8x128xf32>
    %43 = arith.index_cast %c0_i32 : i32 to index
    %c0_21 = arith.constant 0 : index
    %c0_22 = arith.constant 0 : index
    %44 = vector.load %arg10[%43, %c0_21, %c0_22] : memref<1x8x128xf32, #tpu.memory_space<vmem>>, vector<1x8x128xf32>
    %45 = vector.shape_cast %44 : vector<1x8x128xf32> to vector<8x128xf32>
    %46 = vector.shape_cast %42 : vector<8x128xf32> to vector<1x8x128xf32>
    tpu.vector_store %arg10[%43, %c0_21, %c0_22], %46 {strides = array<i32>} : memref<1x8x128xf32, #tpu.memory_space<vmem>>, vector<1x8x128xf32>,
    %c1_i32 = arith.constant 1 : i32
    return
  }
  func.func @transform_0(%arg0: i32) -> (i32, i32, i32) {
    %c0_i32 = arith.constant 0 : i32
    %c0_i32_0 = arith.constant 0 : i32
    %c0_i32_1 = arith.constant 0 : i32
    return %arg0, %c0_i32, %c0_i32_0 : i32, i32, i32
  }
  func.func @transform_1(%arg0: i32) -> (i32, i32, i32) {
    %c0_i32 = arith.constant 0 : i32
    %c0_i32_0 = arith.constant 0 : i32
    %c0_i32_1 = arith.constant 0 : i32
    return %arg0, %c0_i32, %c0_i32_0 : i32, i32, i32
  }
  func.func @transform_2(%arg0: i32) -> (i32, i32) {
    %c0_i32 = arith.constant 0 : i32
    %c0_i32_0 = arith.constant 0 : i32
    %c0_i32_1 = arith.constant 0 : i32
    return %c0_i32, %c0_i32_0 : i32, i32
  }
  func.func @transform_3(%arg0: i32) -> (i32, i32) {
    %c0_i32 = arith.constant 0 : i32
    %c0_i32_0 = arith.constant 0 : i32
    %c0_i32_1 = arith.constant 0 : i32
    return %c0_i32, %c0_i32_0 : i32, i32
  }
  func.func @transform_4(%arg0: i32) -> (i32, i32) {
    %c0_i32 = arith.constant 0 : i32
    %c0_i32_0 = arith.constant 0 : i32
    %c0_i32_1 = arith.constant 0 : i32
    return %c0_i32, %c0_i32_0 : i32, i32
  }
  func.func @transform_5(%arg0: i32) -> (i32, i32) {
    %c0_i32 = arith.constant 0 : i32
    %c0_i32_0 = arith.constant 0 : i32
    %c0_i32_1 = arith.constant 0 : i32
    return %c0_i32, %c0_i32_0 : i32, i32
  }
  func.func @transform_6(%arg0: i32) -> (i32, i32) {
    %c0_i32 = arith.constant 0 : i32
    %c0_i32_0 = arith.constant 0 : i32
    %c0_i32_1 = arith.constant 0 : i32
    return %c0_i32, %c0_i32_0 : i32, i32
  }
  func.func @transform_7(%arg0: i32) -> (i32, i32) {
    %c0_i32 = arith.constant 0 : i32
    %c0_i32_0 = arith.constant 0 : i32
    %c0_i32_1 = arith.constant 0 : i32
    return %c0_i32, %c0_i32_0 : i32, i32
  }
  func.func @transform_8(%arg0: i32) -> (i32, i32) {
    %c0_i32 = arith.constant 0 : i32
    %c0_i32_0 = arith.constant 0 : i32
    %c0_i32_1 = arith.constant 0 : i32
    return %c0_i32, %c0_i32_0 : i32, i32
  }
  func.func @transform_9(%arg0: i32) -> (i32, i32, i32) {
    %c0_i32 = arith.constant 0 : i32
    %c0_i32_0 = arith.constant 0 : i32
    %c0_i32_1 = arith.constant 0 : i32
    return %arg0, %c0_i32, %c0_i32_0 : i32, i32, i32
  }
}

</mosaic_0001>

<bundles_post_ra>
// kernel: tpu_custom_call.1
= control target key start
LH: loop header
LB: loop body
LE: loop exit
PB: predicated region body
PF: predicated region fallthrough
CT: control target
= control target key end

     0   :  { %v1371_v3 = vmov 0   ;;  %vm318_vm0 = vcmask 261120   ;;  %s2244_s0 = inlined_call_operand.vmem [shape: f32[1,32,256], index: 0, kind: input, shape index: {}]   ;;  %s2245_s1 = inlined_call_operand.vmem [shape: f32[1,32,256], index: 1, kind: input, shape index: {}]   ;;  %s2246_s2 = inlined_call_operand.vmem [shape: f32[256,32], index: 2, kind: input, shape index: {}]   ;;  %s2247_s3 = inlined_call_operand.vmem [shape: f32[256,1], index: 3, kind: input, shape index: {}]   ;;  %s2248_s4 = inlined_call_operand.vmem [shape: f32[64,256], index: 4, kind: input, shape index: {}]   ;;  %s2249_s5 = inlined_call_operand.vmem [shape: f32[64,1], index: 5, kind: input, shape index: {}]   ;;  %s2250_s6 = inlined_call_operand.vmem [shape: f32[8,32], index: 6, kind: input, shape index: {}]   ;;  %s2251_s7 = inlined_call_operand.vmem [shape: f32[32,1], index: 7, kind: input, shape index: {}]   ;;  %s2252_s8 = inlined_call_operand.vmem [shape: f32[32,1], index: 8, kind: input, shape index: {}]   ;;  %s2253_s9 = inlined_call_operand.hbm [shape: f32[1,8,128], index: 9, kind: output, shape index: {}]  }
   0x1   :  { %v148_v0 = vld [vmem:[%s2244_s0 + $0x30] sm:$0xff]  ;;  %v149_v1 = vld [vmem:[%s2244_s0 + $0x38] sm:$0xff]  ;;  %1184 = vset.pattern.permute.xlu2 %v1371_v3  ;;  %1183 = vset.pattern.permute.xlu1 %v1371_v3  ;;  %v146_v6 = vld [vmem:[%s2244_s0 + $0x20] sm:$0xff] }
   0x2   :  { %v96_v2 = vld [vmem:[%s2247_s3 + $0xf8] sm:$0xff]  ;;  %v95_v4 = vld [vmem:[%s2247_s3 + $0xf0] sm:$0xff]  ;;  %1182 = vset.pattern.permute.xlu0 %v1371_v3  ;;  %427 = vmatpush.msra.mxu0 %v148_v0  ;;  %v147_v7 = vld [vmem:[%s2244_s0 + $0x28] sm:$0xff] }
   0x3   :  { %v80_v5 = vld [vmem:[%s2247_s3 + $0x78] sm:$0xff]  ;;  %540 = vmatpush.msra.mxu1 %v149_v1  ;;  %315 = vperm.xlu1 %1183, %v96_v2   ;;  %v144_v8 = vld [vmem:[%s2244_s0 + $0x10] sm:$0xff]  ;;  %v142_v10 = vld [vmem:[%s2244_s0] sm:$0xff] }
   0x4   :  { %310 = vperm.xlu2 %1184, %v95_v4   ;;  %235 = vperm.xlu0 %1182, %v80_v5   ;;  %v145_v9 = vld [vmem:[%s2244_s0 + $0x18] sm:$0xff]  ;;  %v143_v11 = vld [vmem:[%s2244_s0 + $0x8] sm:$0xff]  ;;  %v33_v12 = vld [vmem:[%s2246_s2] sm:$0xff] }
   0x5   :  { %428 = vmatpush.msra.mxu0 %v146_v6  ;;  %541 = vmatpush.msra.mxu1 %v147_v7  ;;  %v78_v13 = vld [vmem:[%s2247_s3 + $0x68] sm:$0xff]  ;;  %v79_v14 = vld [vmem:[%s2247_s3 + $0x70] sm:$0xff]  ;;  %v77_v15 = vld [vmem:[%s2247_s3 + $0x60] sm:$0xff] }
   0x6   :  { %1172 = vmatpush.msra.mxu2 %v148_v0  ;;  %1176 = vmatpush.msra.mxu3 %v149_v1 }
   0x7   :  { %429 = vmatpush.msra.mxu0 %v144_v8  ;;  %542 = vmatpush.msra.mxu1 %v145_v9 }
   0x8   :  { %1173 = vmatpush.msra.mxu2 %v146_v6  ;;  %1177 = vmatpush.msra.mxu3 %v147_v7 }
   0x9   :  { %430 = vmatpush.msra.mxu0 %v142_v10  ;;  %543 = vmatpush.msra.mxu1 %v143_v11 }
   0xa   :  { %14 = vsyncpa [#allocation3], 0  ;;  %1106 = vmatmul.msk.f32.vlgmr.msra.gmra.mxu0 %vm318_vm0, %v33_v12  ;;  %1138 = vmatmul.msk.f32.vlgmr.msra.gmra.mxu1 %vm318_vm0, %v33_v12  ;;  %v34_v16 = vld [vmem:[%s2246_s2 + $0x8] sm:$0xff]  ;;  %v76_v17 = vld [vmem:[%s2247_s3 + $0x58] sm:$0xff]  ;;  %s1097_s20 = sshll.u32 %s2253_s9, 4  ;;  %s1098_s20 = int_to_ptr.hbm [resolvable:$true] %s1097_s20 }
   0xb   :  { %225 = vperm.xlu1 %1183, %v78_v13   ;;  %1174 = vmatpush.msra.mxu2 %v144_v8  ;;  %v94_v18 = vld [vmem:[%s2247_s3 + $0xe8] sm:$0xff]  ;;  %v93_v19 = vld [vmem:[%s2247_s3 + $0xe0] sm:$0xff]  ;;  %v35_v20 = vld [vmem:[%s2246_s2 + $0x10] sm:$0xff] }
   0xc   :  { %230 = vperm.xlu0 %1182, %v79_v14   ;;  %220 = vperm.xlu2 %1184, %v77_v15   ;;  %v92_v21 = vld [vmem:[%s2247_s3 + $0xd8] sm:$0xff]  ;;  %v75_v22 = vld [vmem:[%s2247_s3 + $0x50] sm:$0xff]  ;;  %v74_v23 = vld [vmem:[%s2247_s3 + $0x48] sm:$0xff] }
   0xd   :  { %1175 = vmatpush.msra.mxu2 %v142_v10  ;;  %1178 = vmatpush.msra.mxu3 %v145_v9  ;;  %v36_v24 = vld [vmem:[%s2246_s2 + $0x18] sm:$0xff]  ;;  %v73_v25 = vld [vmem:[%s2247_s3 + $0x40] sm:$0xff]  ;;  %v91_v26 = vld [vmem:[%s2247_s3 + $0xd0] sm:$0xff] }
   0xe   :  { %v90_v27 = vld [vmem:[%s2247_s3 + $0xc8] sm:$0xff]  ;;  %v37_v28 = vld [vmem:[%s2246_s2 + $0x20] sm:$0xff]  ;;  %v72_v30 = vld [vmem:[%s2247_s3 + $0x38] sm:$0xff] }
   0xf   :  { %1179 = vmatpush.msra.mxu3 %v143_v11  ;;  %v89_v29 = vld [vmem:[%s2247_s3 + $0xc0] sm:$0xff]  ;;  %v71_v31 = vld [vmem:[%s2247_s3 + $0x30] sm:$0xff]  ;;  %v38_v32 = vld [vmem:[%s2246_s2 + $0x28] sm:$0xff] }
  0x10   :  { %v70_v33 = vld [vmem:[%s2247_s3 + $0x28] sm:$0xff]  ;;  %v88_v34 = vld [vmem:[%s2247_s3 + $0xb8] sm:$0xff]  ;;  %v87_v35 = vld [vmem:[%s2247_s3 + $0xb0] sm:$0xff] }
  0x11   :  { %v39_v36 = vld [vmem:[%s2246_s2 + $0x30] sm:$0xff]  ;;  %v86_v37 = vld [vmem:[%s2247_s3 + $0xa8] sm:$0xff]  ;;  %v69_v38 = vld [vmem:[%s2247_s3 + $0x20] sm:$0xff] }
  0x12   :  { %1107 = vmatmul.msk.f32.gmra.mxu0 %vm318_vm0, %v34_v16  ;;  %1139 = vmatmul.msk.f32.gmra.mxu1 %vm318_vm0, %v34_v16  ;;  %v68_v39 = vld [vmem:[%s2247_s3 + $0x18] sm:$0xff]  ;;  %v59_v40 = vld [vmem:[%s2246_s2 + $0xd0] sm:$0xff]  ;;  %v1561_v41 = vld [vmem:[%s2246_s2 + $0xc8] sm:$0xff] }
  0x13   :  { %215 = vperm.xlu1 %1183, %v76_v17   ;;  %1132 = vmatmul.msk.f32.vlgmr.msra.gmra.mxu2 %vm318_vm0, %v59_v40  ;;  %v40_v42 = vld [vmem:[%s2246_s2 + $0x38] sm:$0xff]  ;;  %v67_v43 = vld [vmem:[%s2247_s3 + $0x10] sm:$0xff]  ;;  %v85_v44 = vld [vmem:[%s2247_s3 + $0xa0] sm:$0xff] }
  0x14   :  { %305 = vperm.xlu0 %1182, %v94_v18   ;;  %300 = vperm.xlu2 %1184, %v93_v19   ;;  %v84_v45 = vld [vmem:[%s2247_s3 + $0x98] sm:$0xff]  ;;  %v41_v47 = vld [vmem:[%s2246_s2 + $0x40] sm:$0xff]  ;;  %v66_v48 = vld [vmem:[%s2247_s3 + $0x8] sm:$0xff] }
  0x15   :  { %1163 = vmatmul.msk.f32.vlgmr.msra.gmra.mxu3 %vm318_vm0, %v1561_v41  ;;  %v60_v46 = vld [vmem:[%s2246_s2 + $0xd8] sm:$0xff]  ;;  %v65_v49 = vld [vmem:[%s2247_s3] sm:$0xff]  ;;  %v83_v51 = vld [vmem:[%s2247_s3 + $0x90] sm:$0xff] }
  0x16   :  { %v61_v50 = vld [vmem:[%s2246_s2 + $0xe0] sm:$0xff]  ;;  %v42_v52 = vld [vmem:[%s2246_s2 + $0x48] sm:$0xff]  ;;  %v43_v56 = vld [vmem:[%s2246_s2 + $0x50] sm:$0xff] }
  0x17   :  { %v62_v53 = vld [vmem:[%s2246_s2 + $0xe8] sm:$0xff]  ;;  %v81_v55 = vld [vmem:[%s2247_s3 + $0x80] sm:$0xff]  ;;  %v63_v57 = vld [vmem:[%s2246_s2 + $0xf0] sm:$0xff] }
  0x18   :  { %v82_v54 = vld [vmem:[%s2247_s3 + $0x88] sm:$0xff]  ;;  %v119_v58 = vld [vmem:[%s2249_s5 + $0x30] sm:$0xff]  ;;  %v44_v60 = vld [vmem:[%s2246_s2 + $0x58] sm:$0xff] }
  0x19   :  { %v118_v59 = vld [vmem:[%s2249_s5 + $0x28] sm:$0xff]  ;;  %v64_v61 = vld [vmem:[%s2246_s2 + $0xf8] sm:$0xff]  ;;  %v115_v63 = vld [vmem:[%s2249_s5 + $0x10] sm:$0xff] }
  0x1a   :  { %1108 = vmatmul.msk.f32.gmra.mxu0 %vm318_vm0, %v35_v20  ;;  %1140 = vmatmul.msk.f32.gmra.mxu1 %vm318_vm0, %v35_v20  ;;  %v116_v62 = vld [vmem:[%s2249_s5 + $0x18] sm:$0xff]  ;;  %v45_v0 = vld [vmem:[%s2246_s2 + $0x60] sm:$0xff]  ;;  %v46_v6 = vld [vmem:[%s2246_s2 + $0x68] sm:$0xff] }
  0x1b   :  { %295 = vperm.xlu1 %1183, %v92_v21   ;;  %1133 = vmatmul.msk.f32.gmra.mxu2 %vm318_vm0, %v60_v46  ;;  %v129_v1 = vld [vmem:[%s2252_s8 + $0x18] sm:$0xff]  ;;  %v113_v2 = vld [vmem:[%s2249_s5] sm:$0xff]  ;;  %v127_v8 = vld [vmem:[%s2252_s8 + $0x8] sm:$0xff] }
  0x1c   :  { %210 = vperm.xlu0 %1182, %v75_v22   ;;  %205 = vperm.xlu2 %1184, %v74_v23   ;;  %v133_v3 = vsub.f32 0.0, %v129_v1  ;;  %v125_v5 = vld [vmem:[%s2251_s7 + $0x18] sm:$0xff]  ;;  %v131_v10 = vsub.f32 0.0, %v127_v8  ;;  %v123_v11 = vld [vmem:[%s2251_s7 + $0x8] sm:$0xff]  ;;  %v47_v13 = vld [vmem:[%s2246_s2 + $0x70] sm:$0xff] }
  0x1d   :  { %1164 = vmatmul.msk.f32.gmra.mxu3 %vm318_vm0, %v59_v40  ;;  %v120_v7 = vld [vmem:[%s2249_s5 + $0x38] sm:$0xff]  ;;  %v122_v14 = vld [vmem:[%s2251_s7] sm:$0xff]  ;;  %v114_v18 = vld [vmem:[%s2249_s5 + $0x8] sm:$0xff] }
  0x1e   :  { %v140_v4 = vmul.f32 1.442695, %v133_v3  ;;  %v136_v12 = vmul.f32 1.442695, %v131_v10  ;;  %v117_v15 = vld [vmem:[%s2249_s5 + $0x20] sm:$0xff]  ;;  %v48_v17 = vld [vmem:[%s2246_s2 + $0x78] sm:$0xff] }
  0x1f   :  { %v49_v21 = vld [vmem:[%s2246_s2 + $0x80] sm:$0xff]  ;;  %v124_v22 = vld [vmem:[%s2251_s7 + $0x10] sm:$0xff] }
  0x20   :  { %1185 = vpow2.f32 %v140_v4  ;;  %v128_v23 = vld [vmem:[%s2252_s8 + $0x10] sm:$0xff] }
  0x21   :  { %1187 = vpow2.f32 %v136_v12 }
  0x22   :  { %1109 = vmatmul.msk.f32.gmra.mxu0 %vm318_vm0, %v36_v24  ;;  %1141 = vmatmul.msk.f32.gmra.mxu1 %vm318_vm0, %v36_v24  ;;  %v132_v24 = vsub.f32 0.0, %v128_v23 }
  0x23   :  { %200 = vperm.xlu1 %1183, %v73_v25   ;;  %1134 = vmatmul.msk.f32.gmra.mxu2 %vm318_vm0, %v61_v50 }
  0x24   :  { %290 = vperm.xlu0 %1182, %v91_v26   ;;  %285 = vperm.xlu2 %1184, %v90_v27   ;;  %v138_v25 = vmul.f32 1.442695, %v132_v24 }
  0x25   :  { %1165 = vmatmul.msk.f32.gmra.mxu3 %vm318_vm0, %v60_v46  ;;  %v54_v46 = vld [vmem:[%s2246_s2 + $0xa8] sm:$0xff] }
  0x26   :  { %v1186_v9 = vpop.eup %1185  ;;  %1189 = vpow2.f32 %v138_v25 }
  0x27   :  { %v1188_v16 = vpop.eup %1187 }
  0x2a   :  { %1110 = vmatmul.msk.f32.gmra.mxu0 %vm318_vm0, %v37_v28  ;;  %1142 = vmatmul.msk.f32.gmra.mxu1 %vm318_vm0, %v37_v28  ;;  %v50_v28 = vld [vmem:[%s2246_s2 + $0x88] sm:$0xff] }
  0x2b   :  { %280 = vperm.xlu1 %1183, %v89_v29   ;;  %1135 = vmatmul.msk.f32.gmra.mxu2 %vm318_vm0, %v62_v53  ;;  %v126_v29 = vld [vmem:[%s2252_s8] sm:$0xff] }
  0x2c   :  { %195 = vperm.xlu0 %1182, %v72_v30   ;;  %190 = vperm.xlu2 %1184, %v71_v31   ;;  %v130_v30 = vsub.f32 0.0, %v126_v29  ;;  %v1190_v31 = vpop.eup %1189 }
  0x2d   :  { %1166 = vmatmul.msk.f32.gmra.mxu3 %vm318_vm0, %v61_v50 }
  0x32   :  { %1111 = vmatmul.msk.f32.gmra.mxu0 %vm318_vm0, %v38_v32  ;;  %1143 = vmatmul.msk.f32.gmra.mxu1 %vm318_vm0, %v38_v32  ;;  %v134_v32 = vmul.f32 1.442695, %v130_v30 }
  0x33   :  { %185 = vperm.xlu1 %1183, %v70_v33   ;;  %1136 = vmatmul.msk.f32.gmra.mxu2 %vm318_vm0, %v63_v57 }
  0x34   :  { %275 = vperm.xlu0 %1182, %v88_v34   ;;  %270 = vperm.xlu2 %1184, %v87_v35   ;;  %v51_v35 = vld [vmem:[%s2246_s2 + $0x90] sm:$0xff]  ;;  %1191 = vpow2.f32 %v134_v32 }
  0x35   :  { %1167 = vmatmul.msk.f32.gmra.mxu3 %vm318_vm0, %v62_v53 }
  0x3a   :  { %1112 = vmatmul.msk.f32.gmra.mxu0 %vm318_vm0, %v39_v36  ;;  %1144 = vmatmul.msk.f32.gmra.mxu1 %vm318_vm0, %v39_v36  ;;  %v1192_v36 = vpop.eup %1191 }
  0x3b   :  { %265 = vperm.xlu1 %1183, %v86_v37   ;;  %1137 = vmatmul.msk.f32.gmra.mxu2 %vm318_vm0, %v64_v61 }
  0x3c   :  { %180 = vperm.xlu0 %1182, %v69_v38   ;;  %175 = vperm.xlu2 %1184, %v68_v39   ;;  %v52_v39 = vld [vmem:[%s2246_s2 + $0x98] sm:$0xff] }
  0x3d   :  { %1168 = vmatmul.msk.f32.gmra.mxu3 %vm318_vm0, %v63_v57 }
  0x42   :  { %1113 = vmatmul.msk.f32.gmra.mxu0 %vm318_vm0, %v40_v42  ;;  %1145 = vmatmul.msk.f32.gmra.mxu1 %vm318_vm0, %v40_v42 }
  0x43   :  { %170 = vperm.xlu1 %1183, %v67_v43   ;;  %v53_v43 = vld [vmem:[%s2246_s2 + $0xa0] sm:$0xff] }
  0x44   :  { %260 = vperm.xlu0 %1182, %v85_v44   ;;  %255 = vperm.xlu2 %1184, %v84_v45  }
  0x45   :  { %1169 = vmatmul.msk.f32.gmra.mxu3 %vm318_vm0, %v64_v61 }
  0x4a   :  { %1114 = vmatmul.msk.f32.gmra.mxu0 %vm318_vm0, %v41_v47  ;;  %1146 = vmatmul.msk.f32.gmra.mxu1 %vm318_vm0, %v41_v47 }
  0x4b   :  { %250 = vperm.xlu1 %1183, %v83_v51  }
  0x4c   :  { %165 = vperm.xlu0 %1182, %v66_v48   ;;  %160 = vperm.xlu2 %1184, %v65_v49   ;;  %v55_v48 = vld [vmem:[%s2246_s2 + $0xb0] sm:$0xff] }
  0x52   :  { %1115 = vmatmul.msk.f32.gmra.mxu0 %vm318_vm0, %v42_v52  ;;  %1147 = vmatmul.msk.f32.gmra.mxu1 %vm318_vm0, %v42_v52 }
  0x53   :  { %240 = vperm.xlu1 %1183, %v81_v55  }
  0x54   :  { %245 = vperm.xlu0 %1182, %v82_v54   ;;  %742 = vperm.xlu2 %1184, %v120_v7   ;;  %v56_v54 = vld [vmem:[%s2246_s2 + $0xb8] sm:$0xff] }
  0x5a   :  { %1116 = vmatmul.msk.f32.gmra.mxu0 %vm318_vm0, %v43_v56  ;;  %1148 = vmatmul.msk.f32.gmra.mxu1 %vm318_vm0, %v43_v56 }
  0x5b   :  { %732 = vperm.xlu1 %1183, %v118_v59  }
  0x5c   :  { %737 = vperm.xlu0 %1182, %v119_v58   ;;  %727 = vperm.xlu2 %1184, %v117_v15  }
  0x5e   :  { %v1773_v52 = vpop.permute.xlu2 %310 }
  0x62   :  { %1117 = vmatmul.msk.f32.gmra.mxu0 %vm318_vm0, %v44_v60  ;;  %1149 = vmatmul.msk.f32.gmra.mxu1 %vm318_vm0, %v44_v60  ;;  %v57_v60 = vld [vmem:[%s2246_s2 + $0xc0] sm:$0xff] }
  0x63   :  { %717 = vperm.xlu1 %1183, %v115_v63  }
  0x64   :  { %722 = vperm.xlu0 %1182, %v116_v62   ;;  %712 = vperm.xlu2 %1184, %v114_v18  }
  0x66   :  { %v1793_v61 = vpop.permute.xlu2 %220 }
  0x6a   :  { %1118 = vmatmul.msk.f32.gmra.mxu0 %vm318_vm0, %v45_v0  ;;  %1150 = vmatmul.msk.f32.gmra.mxu1 %vm318_vm0, %v45_v0 }
  0x6b   :  { %966 = vperm.xlu1 %1183, %v125_v5  }
  0x6c   :  { %707 = vperm.xlu0 %1182, %v113_v2   ;;  %961 = vperm.xlu2 %1184, %v124_v22  }
  0x6e   :  { %v1807_v3 = vpop.permute.xlu2 %300 }
  0x72   :  { %1119 = vmatmul.msk.f32.gmra.mxu0 %vm318_vm0, %v46_v6  ;;  %1151 = vmatmul.msk.f32.gmra.mxu1 %vm318_vm0, %v46_v6 }
  0x73   :  { %956 = vperm.xlu1 %1183, %v123_v11  }
  0x74   :  { %994 = vperm.xlu0 %1182, %v1186_v9   ;;  %989 = vperm.xlu2 %1184, %v1190_v31  }
  0x75   :  { %v1784_v56 = vpop.permute.xlu1 %315 }
  0x76   :  { %v1771_v50 = vpop.permute.xlu0 %235  ;;  %v1815_v9 = vpop.permute.xlu2 %205 }
  0x7a   :  { %1120 = vmatmul.msk.f32.gmra.mxu0 %vm318_vm0, %v47_v13  ;;  %1152 = vmatmul.msk.f32.gmra.mxu1 %vm318_vm0, %v47_v13 }
  0x7b   :  { %984 = vperm.xlu1 %1183, %v1188_v16  }
  0x7c   :  { %951 = vperm.xlu0 %1182, %v122_v14   ;;  %979 = vperm.xlu2 %1184, %v1192_v36  }
  0x7d   :  { %v1799_v0 = vpop.permute.xlu1 %225 }
  0x7e   :  { %v1786_v58 = vpop.permute.xlu0 %230  ;;  %v1824_v16 = vpop.permute.xlu2 %285 }
  0x82   :  { %1121 = vmatmul.msk.f32.gmra.mxu0 %vm318_vm0, %v48_v17  ;;  %1153 = vmatmul.msk.f32.gmra.mxu1 %vm318_vm0, %v48_v17 }
  0x85   :  { %v1811_v7 = vpop.permute.xlu1 %215 }
  0x86   :  { %v1803_v2 = vpop.permute.xlu0 %305  ;;  %v1837_v36 = vpop.permute.xlu2 %190 }
  0x87   :  { %v1699_v19 = vpop.f32.mrf.mxu0  ;;  %v1701_v20 = vpop.f32.mrf.mxu1 }
  0x8a   :  { %1122 = vmatmul.msk.f32.gmra.mxu0 %vm318_vm0, %v49_v21  ;;  %1154 = vmatmul.msk.f32.gmra.mxu1 %vm318_vm0, %v49_v21 }
  0x8d   :  { %v1819_v13 = vpop.permute.xlu1 %295 }
  0x8e   :  { %v1813_v8 = vpop.permute.xlu0 %210 }
  0x8f   :  { %v1714_v26 = vpop.f32.mrf.mxu0  ;;  %v1716_v27 = vpop.f32.mrf.mxu1 }
  0x92   :  { %1123 = vmatmul.msk.f32.gmra.mxu0 %vm318_vm0, %v50_v28  ;;  %1155 = vmatmul.msk.f32.gmra.mxu1 %vm318_vm0, %v50_v28 }
  0x95   :  { %v1832_v25 = vpop.permute.xlu1 %200 }
  0x96   :  { %v510_v51 = vpop.f32.mrf.mxu2  ;;  %v1822_v14 = vpop.permute.xlu0 %290 }
  0x97   :  { %v1726_v33 = vpop.f32.mrf.mxu0  ;;  %v1728_v34 = vpop.f32.mrf.mxu1  ;;  %v511_v28 = vadd.f32 %v510_v51, %v1822_v14 }
  0x9a   :  { %1124 = vmatmul.msk.f32.gmra.mxu0 %vm318_vm0, %v51_v35  ;;  %1156 = vmatmul.msk.f32.gmra.mxu1 %vm318_vm0, %v51_v35 }
  0x9d   :  { %v1841_v51 = vpop.permute.xlu1 %280 }
  0x9e   :  { %v513_v57 = vpop.f32.mrf.mxu2  ;;  %v1835_v31 = vpop.permute.xlu0 %195 }
  0x9f   :  { %v1735_v37 = vpop.f32.mrf.mxu0  ;;  %v1737_v38 = vpop.f32.mrf.mxu1  ;;  %v514_v24 = vadd.f32 %v513_v57, %v1819_v13 }
  0xa2   :  { %1125 = vmatmul.msk.f32.gmra.mxu0 %vm318_vm0, %v52_v39  ;;  %1157 = vmatmul.msk.f32.gmra.mxu1 %vm318_vm0, %v52_v39 }
  0xa6   :  { %v516_v63 = vpop.f32.mrf.mxu2  ;;  %v1843_v57 = vpop.permute.xlu0 %275 }
  0xa7   :  { %v1744_v40 = vpop.f32.mrf.mxu0  ;;  %v1746_v42 = vpop.f32.mrf.mxu1  ;;  %v517_v22 = vadd.f32 %v516_v63, %v1807_v3 }
  0xaa   :  { %1126 = vmatmul.msk.f32.gmra.mxu0 %vm318_vm0, %v53_v43  ;;  %1158 = vmatmul.msk.f32.gmra.mxu1 %vm318_vm0, %v53_v43 }
  0xae   :  { %v519_v4 = vpop.f32.mrf.mxu2 }
  0xaf   :  { %v1753_v44 = vpop.f32.mrf.mxu0  ;;  %v1755_v45 = vpop.f32.mrf.mxu1  ;;  %v520_v18 = vadd.f32 %v519_v4, %v1803_v2 }
  0xb2   :  { %1127 = vmatmul.msk.f32.gmra.mxu0 %vm318_vm0, %v54_v46  ;;  %1159 = vmatmul.msk.f32.gmra.mxu1 %vm318_vm0, %v54_v46 }
  0xb6   :  { %v522_v10 = vpop.f32.mrf.mxu2 }
  0xb7   :  { %v1762_v47 = vpop.f32.mrf.mxu0  ;;  %v1767_v49 = vpop.f32.mrf.mxu1 }
  0xba   :  { %1128 = vmatmul.msk.f32.gmra.mxu0 %vm318_vm0, %v55_v48  ;;  %1160 = vmatmul.msk.f32.gmra.mxu1 %vm318_vm0, %v55_v48 }
  0xbe   :  { %v525_v15 = vpop.f32.mrf.mxu2 }
  0xbf   :  { %v1775_v53 = vpop.f32.mrf.mxu0  ;;  %v1782_v55 = vpop.f32.mrf.mxu1  ;;  %v526_v21 = vadd.f32 %v525_v15, %v1784_v56 }
  0xc0   :  { %v1851_v15 = vpop.permute.xlu1 %185 }
  0xc2   :  { %1129 = vmatmul.msk.f32.gmra.mxu0 %vm318_vm0, %v56_v54  ;;  %1161 = vmatmul.msk.f32.gmra.mxu1 %vm318_vm0, %v56_v54 }
  0xc7   :  { %v1788_v59 = vpop.f32.mrf.mxu0  ;;  %v1797_v62 = vpop.f32.mrf.mxu1 }
  0xca   :  { %1130 = vmatmul.msk.f32.gmra.mxu0 %vm318_vm0, %v57_v60  ;;  %1162 = vmatmul.msk.f32.gmra.mxu1 %vm318_vm0, %v57_v60  ;;  %v1845_v60 = vpop.permute.xlu2 %270 }
  0xcf   :  { %v1801_v1 = vpop.f32.mrf.mxu0  ;;  %v1809_v5 = vpop.f32.mrf.mxu1 }
  0xd2   :  { %1131 = vmatmul.msk.f32.gmra.mxu0 %vm318_vm0, %v1561_v41  ;;  %v523_v41 = vadd.f32 %v522_v10, %v1773_v52 }
  0xd4   :  { %1193 = vtanh.f32 %v523_v41 }
  0xd5   :  { %1195 = vtanh.f32 %v526_v21  ;;  %v1854_v21 = vpop.permute.xlu0 %180 }
  0xd6   :  { %1197 = vtanh.f32 %v520_v18 }
  0xd7   :  { %v462_v6 = vpop.f32.mrf.mxu0  ;;  %v1817_v12 = vpop.f32.mrf.mxu1  ;;  %1199 = vtanh.f32 %v517_v22 }
  0xd8   :  { %1201 = vtanh.f32 %v514_v24  ;;  %v1857_v24 = vpop.permute.xlu2 %175 }
  0xd9   :  { %1203 = vtanh.f32 %v511_v28 }
  0xda   :  { %v1194_v29 = vpop.eup %1193 }
  0xdb   :  { %v1196_v30 = vpop.eup %1195 }
  0xdc   :  { %786 = vmatpush.msrb.mxu3 %v1196_v30  ;;  %v1198_v35 = vpop.eup %1197 }
  0xdd   :  { %v1200_v39 = vpop.eup %1199 }
  0xde   :  { %787 = vmatpush.msrb.mxu3 %v1194_v29  ;;  %v1202_v43 = vpop.eup %1201 }
  0xdf   :  { %v465_v11 = vpop.f32.mrf.mxu0  ;;  %v1829_v23 = vpop.f32.mrf.mxu1 }
  0xe0   :  { %788 = vmatpush.msrb.mxu3 %v1198_v35  ;;  %v1204_v48 = vpop.eup %1203  ;;  %v466_v28 = vadd.f32 %v465_v11, %v1811_v7  ;;  %v463_v35 = vadd.f32 %v462_v6, %v1813_v8  ;;  %v457_v11 = vadd.f32 %v1788_v59, %v1832_v25 }
  0xe2   :  { %789 = vmatpush.msrb.mxu3 %v1200_v39 }
  0xe4   :  { %790 = vmatpush.msrb.mxu3 %v1202_v43  ;;  %v460_v43 = vadd.f32 %v1801_v1, %v1815_v9 }
  0xe6   :  { %791 = vmatpush.msrb.mxu3 %v1204_v48 }
  0xe7   :  { %v468_v17 = vpop.f32.mrf.mxu0  ;;  %v1839_v46 = vpop.f32.mrf.mxu1 }
  0xe8   :  { %v469_v22 = vadd.f32 %v468_v17, %v1793_v61  ;;  %v1865_v17 = vpop.permute.xlu1 %265 }
  0xef   :  { %v471_v32 = vpop.f32.mrf.mxu0  ;;  %v1847_v63 = vpop.f32.mrf.mxu1 }
  0xf0   :  { %v472_v18 = vadd.f32 %v471_v32, %v1799_v0 }
  0xf7   :  { %v474_v54 = vpop.f32.mrf.mxu0  ;;  %v587_v39 = vpop.f32.mrf.mxu1 }
  0xf8   :  { %v475_v10 = vadd.f32 %v474_v54, %v1786_v58  ;;  %v1869_v54 = vpop.permute.xlu0 %260 }
  0xff   :  { %v477_v4 = vpop.f32.mrf.mxu0 }
 0x100   :  { %v478_v41 = vadd.f32 %v477_v4, %v1771_v50  ;;  %v454_v4 = vadd.f32 %v1775_v53, %v1835_v31 }
 0x102   :  { %1205 = vtanh.f32 %v478_v41 }
 0x103   :  { %1207 = vtanh.f32 %v475_v10  ;;  %v1873_v10 = vpop.permute.xlu2 %255 }
 0x104   :  { %1209 = vtanh.f32 %v472_v18  ;;  %v451_v18 = vadd.f32 %v1762_v47, %v1837_v36  ;;  %v442_v47 = vadd.f32 %v1735_v37, %v1857_v24 }
 0x105   :  { %1211 = vtanh.f32 %v469_v22  ;;  %v448_v22 = vadd.f32 %v1753_v44, %v1851_v15 }
 0x106   :  { %1213 = vtanh.f32 %v466_v28  ;;  %v590_v28 = vpop.f32.mrf.mxu1 }
 0x107   :  { %v1860_v29 = vpop.f32.mrf.mxu0  ;;  %1215 = vtanh.f32 %v463_v35  ;;  %v1883_v35 = vpop.permute.xlu1 %170 }
 0x108   :  { %v1206_v30 = vpop.eup %1205  ;;  %1217 = vtanh.f32 %v460_v43  ;;  %v1887_v43 = vpop.permute.xlu0 %165 }
 0x109   :  { %745 = vmatpush.msrb.mxu2 %v1206_v30  ;;  %v1208_v32 = vpop.eup %1207  ;;  %1219 = vtanh.f32 %v457_v11  ;;  %v445_v30 = vadd.f32 %v1744_v40, %v1854_v21  ;;  %v439_v11 = vadd.f32 %v1726_v33, %v1883_v35  ;;  %v591_v33 = vadd.f32 %v590_v28, %v1771_v50  ;;  %v1914_v28 = vld [vmem:[%s2248_s4] sm:$0xff] }
 0x10a   :  { %v1210_v48 = vpop.eup %1209  ;;  %1221 = vtanh.f32 %v454_v4  ;;  %v436_v4 = vadd.f32 %v1714_v26, %v1887_v43  ;;  %v588_v26 = vadd.f32 %v587_v39, %v1786_v58  ;;  %v582_v50 = vadd.f32 %v1839_v46, %v1793_v61 }
 0x10b   :  { %746 = vmatpush.msrb.mxu2 %v1208_v32  ;;  %v1212_v6 = vpop.eup %1211  ;;  %1223 = vtanh.f32 %v451_v18  ;;  %v1893_v40 = vpop.permute.xlu2 %160  ;;  %v579_v39 = vadd.f32 %v1829_v23, %v1811_v7  ;;  %v576_v61 = vadd.f32 %v1817_v12, %v1813_v8  ;;  %v570_v23 = vadd.f32 %v1797_v62, %v1832_v25  ;;  %v1934_v8 = vld [vmem:[%s2248_s4 + $0x10] sm:$0xff] }
 0x10c   :  { %v1214_v41 = vpop.eup %1213  ;;  %1225 = vtanh.f32 %v448_v22  ;;  %v564_v62 = vadd.f32 %v1767_v49, %v1837_v36  ;;  %v1952_v49 = vld [vmem:[%s2248_s4 + $0x20] sm:$0xff] }
 0x10d   :  { %747 = vmatpush.msrb.mxu2 %v1210_v48  ;;  %v1216_v59 = vpop.eup %1215  ;;  %1227 = vtanh.f32 %v445_v30 }
 0x10e   :  { %v1218_v53 = vpop.eup %1217  ;;  %1229 = vtanh.f32 %v442_v47  ;;  %v1899_v18 = vpop.f32.mrf.mxu1 }
 0x10f   :  { %v1875_v1 = vpop.f32.mrf.mxu0  ;;  %748 = vmatpush.msrb.mxu2 %v1212_v6  ;;  %v1220_v32 = vpop.eup %1219  ;;  %1231 = vtanh.f32 %v439_v11  ;;  %v573_v11 = vadd.f32 %v1809_v5, %v1815_v9 }
 0x110   :  { %v1222_v44 = vpop.eup %1221  ;;  %1233 = vtanh.f32 %v436_v4  ;;  %v567_v4 = vadd.f32 %v1782_v55, %v1835_v31  ;;  %v558_v31 = vadd.f32 %v1746_v42, %v1854_v21  ;;  %v552_v42 = vadd.f32 %v1728_v34, %v1883_v35  ;;  %v1970_v34 = vld [vmem:[%s2248_s4 + $0x30] sm:$0xff] }
 0x111   :  { %749 = vmatpush.msrb.mxu2 %v1214_v41  ;;  %v1224_v6 = vpop.eup %1223  ;;  %v433_v41 = vadd.f32 %v1699_v19, %v1893_v40  ;;  %v585_v19 = vadd.f32 %v1847_v63, %v1799_v0 }
 0x112   :  { %v1226_v37 = vpop.eup %1225 }
 0x113   :  { %750 = vmatpush.msrb.mxu2 %v1216_v59  ;;  %v1228_v59 = vpop.eup %1227  ;;  %1235 = vtanh.f32 %v433_v41  ;;  %v561_v41 = vadd.f32 %v1755_v45, %v1851_v15 }
 0x114   :  { %1237 = vtanh.f32 %v591_v33 }
 0x115   :  { %751 = vmatpush.msrb.mxu2 %v1218_v53  ;;  %v1230_v53 = vpop.eup %1229  ;;  %1239 = vtanh.f32 %v588_v26 }
 0x116   :  { %v1232_v30 = vpop.eup %1231  ;;  %1241 = vtanh.f32 %v585_v19  ;;  %v1918_v0 = vpop.f32.mrf.mxu1 }
 0x117   :  { %v1889_v48 = vpop.f32.mrf.mxu0  ;;  %752 = vmatpush.msrb.mxu2 %v1220_v32  ;;  %v1907_v32 = vpop.f32.mrf.mxu3  ;;  %1243 = vtanh.f32 %v582_v50 }
 0x118   :  { %v1234_v47 = vpop.eup %1233  ;;  %1245 = vtanh.f32 %v579_v39 }
 0x119   :  { %753 = vmatpush.msrb.mxu2 %v1222_v44  ;;  %v1236_v58 = vpop.eup %1235  ;;  %1247 = vtanh.f32 %v576_v61 }
 0x11a   :  { %v1238_v44 = vpop.eup %1237  ;;  %1249 = vtanh.f32 %v573_v11 }
 0x11b   :  { %754 = vmatpush.msrb.mxu2 %v1224_v6  ;;  %v1240_v46 = vpop.eup %1239  ;;  %1251 = vtanh.f32 %v570_v23 }
 0x11c   :  { %v1242_v7 = vpop.eup %1241  ;;  %1253 = vtanh.f32 %v567_v4  ;;  %v1995_v4 = vpop.permute.xlu1 %250 }
 0x11d   :  { %755 = vmatpush.msrb.mxu2 %v1226_v37  ;;  %v1244_v12 = vpop.eup %1243  ;;  %1255 = vtanh.f32 %v564_v62  ;;  %v2000_v62 = vld [vmem:[%s2248_s4 + $0x60] sm:$0xff] }
 0x11e   :  { %v1246_v9 = vpop.eup %1245  ;;  %v1943_v25 = vpop.f32.mrf.mxu1  ;;  %1257 = vtanh.f32 %v561_v41 }
 0x11f   :  { %v1902_v22 = vpop.f32.mrf.mxu0  ;;  %756 = vmatpush.msrb.mxu2 %v1228_v59  ;;  %v1929_v6 = vpop.f32.mrf.mxu3  ;;  %v555_v59 = vadd.f32 %v1737_v38, %v1857_v24  ;;  %1259 = vtanh.f32 %v558_v31  ;;  %v546_v24 = vadd.f32 %v1701_v20, %v1893_v40 }
 0x120   :  { %v1248_v37 = vpop.eup %1247 }
 0x121   :  { %757 = vmatpush.msrb.mxu2 %v1230_v53  ;;  %v1250_v55 = vpop.eup %1249  ;;  %1261 = vtanh.f32 %v555_v59  ;;  %v549_v53 = vadd.f32 %v1716_v27, %v1887_v43  ;;  %v490_v59 = vadd.f32 %v1902_v22, %v1873_v10 }
 0x122   :  { %v1252_v36 = vpop.eup %1251  ;;  %1263 = vtanh.f32 %v552_v42 }
 0x123   :  { %758 = vmatpush.msrb.mxu2 %v1232_v30  ;;  %v1254_v15 = vpop.eup %1253  ;;  %1265 = vtanh.f32 %v549_v53 }
 0x124   :  { %v1256_v21 = vpop.eup %1255  ;;  %1267 = vtanh.f32 %v546_v24  ;;  %v2022_v22 = vpop.permute.xlu1 %240 }
 0x125   :  { %759 = vmatpush.msrb.mxu2 %v1234_v47  ;;  %v1258_v38 = vpop.eup %1257  ;;  %v1980_v47 = vld [vmem:[%s2248_s4 + $0x40] sm:$0xff] }
 0x126   :  { %v1963_v26 = vpop.f32.mrf.mxu1  ;;  %v1260_v35 = vpop.eup %1259 }
 0x127   :  { %v1920_v63 = vpop.f32.mrf.mxu0  ;;  %760 = vmatpush.msrb.mxu2 %v1236_v58  ;;  %v1956_v33 = vpop.f32.mrf.mxu3 }
 0x128   :  { %761 = vmatmul.f32.vlgmr.msrb.gmra.mxu2 %v1914_v28  ;;  %v1262_v19 = vpop.eup %1261 }
 0x129   :  { %827 = vmatpush.msra.mxu2 %v1238_v44  ;;  %v1264_v43 = vpop.eup %1263  ;;  %v1986_v44 = vld [vmem:[%s2248_s4 + $0x50] sm:$0xff] }
 0x12a   :  { %v1266_v20 = vpop.eup %1265 }
 0x12b   :  { %828 = vmatpush.msra.mxu2 %v1240_v46  ;;  %v1268_v50 = vpop.eup %1267 }
 0x12d   :  { %829 = vmatpush.msra.mxu2 %v1242_v7 }
 0x12e   :  { %v1975_v40 = vpop.f32.mrf.mxu1 }
 0x12f   :  { %830 = vmatpush.msra.mxu2 %v1244_v12  ;;  %v1938_v5 = vpop.f32.mrf.mxu0  ;;  %v1973_v27 = vpop.f32.mrf.mxu3 }
 0x130   :  { %764 = vmatmul.f32.gmra.mxu2 %v1934_v8 }
 0x131   :  { %831 = vmatpush.msra.mxu2 %v1246_v9 }
 0x133   :  { %832 = vmatpush.msra.mxu2 %v1248_v37  ;;  %v496_v37 = vadd.f32 %v1938_v5, %v1865_v17  ;;  %v487_v5 = vadd.f32 %v1889_v48, %v1995_v4  ;;  %v481_v48 = vadd.f32 %v1860_v29, %v2022_v22 }
 0x135   :  { %833 = vmatpush.msra.mxu2 %v1250_v55  ;;  %v493_v55 = vadd.f32 %v1920_v63, %v1869_v54  ;;  %v2018_v63 = vld [vmem:[%s2248_s4 + $0x70] sm:$0xff] }
 0x136   :  { %v1988_v61 = vpop.f32.mrf.mxu1 }
 0x137   :  { %834 = vmatpush.msra.mxu2 %v1252_v36  ;;  %v498_v45 = vpop.f32.mrf.mxu0  ;;  %v632_v39 = vpop.f32.mrf.mxu3 }
 0x138   :  { %767 = vmatmul.f32.gmra.mxu2 %v1952_v49  ;;  %v499_v12 = vadd.f32 %v498_v45, %v1845_v60 }
 0x139   :  { %835 = vmatpush.msra.mxu2 %v1254_v15  ;;  %v2013_v15 = vpop.permute.xlu0 %245 }
 0x13b   :  { %836 = vmatpush.msra.mxu2 %v1256_v21  ;;  %v484_v21 = vadd.f32 %v1875_v1, %v2013_v15 }
 0x13d   :  { %837 = vmatpush.msra.mxu2 %v1258_v38 }
 0x13e   :  { %v2007_v31 = vpop.f32.mrf.mxu1 }
 0x13f   :  { %838 = vmatpush.msra.mxu2 %v1260_v35  ;;  %v501_v30 = vpop.f32.mrf.mxu0  ;;  %v635_v9 = vpop.f32.mrf.mxu3 }
 0x140   :  { %770 = vmatmul.f32.gmra.mxu2 %v1970_v34  ;;  %v502_v23 = vadd.f32 %v501_v30, %v1843_v57 }
 0x141   :  { %839 = vmatpush.msra.mxu2 %v1262_v19  ;;  %v636_v19 = vadd.f32 %v635_v9, %v1773_v52  ;;  %v108_v9 = vld [vmem:[%s2248_s4 + $0x58] sm:$0xff] }
 0x143   :  { %840 = vmatpush.msra.mxu2 %v1264_v43 }
 0x145   :  { %841 = vmatpush.msra.mxu2 %v1266_v20  ;;  %v633_v20 = vadd.f32 %v632_v39, %v1803_v2  ;;  %v624_v39 = vadd.f32 %v1929_v6, %v1822_v14  ;;  %v2050_v14 = vld [vmem:[%s2248_s4 + $0x18] sm:$0xff] }
 0x146   :  { %v614_v30 = vpop.f32.mrf.mxu1 }
 0x147   :  { %842 = vmatpush.msra.mxu2 %v1268_v50  ;;  %v504_v58 = vpop.f32.mrf.mxu0  ;;  %v638_v53 = vpop.f32.mrf.mxu3  ;;  %v630_v50 = vadd.f32 %v1973_v27, %v1807_v3  ;;  %v621_v27 = vadd.f32 %v1907_v32, %v1824_v16  ;;  %v612_v32 = vadd.f32 %v2007_v31, %v1845_v60 }
 0x148   :  { %773 = vmatmul.f32.gmra.mxu2 %v1980_v47  ;;  %v505_v11 = vadd.f32 %v504_v58, %v1841_v51  ;;  %v639_v35 = vadd.f32 %v638_v53, %v1784_v56  ;;  %v2036_v56 = vld [vmem:[%s2248_s4 + $0x8] sm:$0xff]  ;;  %v627_v58 = vadd.f32 %v1956_v33, %v1819_v13  ;;  %v615_v33 = vadd.f32 %v614_v30, %v1843_v57  ;;  %v2100_v53 = vpop.permute.xlu2 %742 }
 0x149   :  { %v102_v57 = vld [vmem:[%s2248_s4 + $0x28] sm:$0xff] }
 0x14e   :  { %v617_v3 = vpop.f32.mrf.mxu1 }
 0x14f   :  { %v507_v46 = vpop.f32.mrf.mxu0  ;;  %v618_v13 = vadd.f32 %v617_v3, %v1841_v51 }
 0x150   :  { %v508_v7 = vadd.f32 %v507_v46, %v1824_v16  ;;  %776 = vmatmul.f32.gmra.mxu2 %v1986_v44  ;;  %v2106_v30 = vpop.permute.xlu2 %727 }
 0x152   :  { %1269 = vtanh.f32 %v508_v7  ;;  %v606_v7 = vadd.f32 %v1975_v40, %v1869_v54 }
 0x153   :  { %1271 = vtanh.f32 %v505_v11 }
 0x154   :  { %1273 = vtanh.f32 %v502_v23  ;;  %v603_v23 = vadd.f32 %v1963_v26, %v1873_v10  ;;  %v104_v10 = vld [vmem:[%s2248_s4 + $0x38] sm:$0xff] }
 0x155   :  { %1275 = vtanh.f32 %v499_v12  ;;  %v594_v12 = vadd.f32 %v1899_v18, %v2022_v22  ;;  %v106_v18 = vld [vmem:[%s2248_s4 + $0x48] sm:$0xff] }
 0x156   :  { %1277 = vtanh.f32 %v496_v37  ;;  %v112_v37 = vld [vmem:[%s2248_s4 + $0x78] sm:$0xff] }
 0x157   :  { %1279 = vtanh.f32 %v493_v55 }
 0x158   :  { %v1270_v41 = vpop.eup %1269  ;;  %779 = vmatmul.f32.gmra.mxu2 %v2000_v62  ;;  %1281 = vtanh.f32 %v490_v59 }
 0x159   :  { %792 = vmatpush.msrb.mxu3 %v1270_v41  ;;  %v1272_v36 = vpop.eup %1271  ;;  %1283 = vtanh.f32 %v487_v5  ;;  %v2094_v41 = vpop.permute.xlu0 %737 }
 0x15a   :  { %v1274_v45 = vpop.eup %1273  ;;  %1285 = vtanh.f32 %v484_v21 }
 0x15b   :  { %793 = vmatpush.msrb.mxu3 %v1272_v36  ;;  %v1276_v42 = vpop.eup %1275  ;;  %1287 = vtanh.f32 %v481_v48 }
 0x15c   :  { %v1278_v38 = vpop.eup %1277  ;;  %1289 = vtanh.f32 %v639_v35 }
 0x15d   :  { %794 = vmatpush.msrb.mxu3 %v1274_v45  ;;  %v1280_v24 = vpop.eup %1279  ;;  %1291 = vtanh.f32 %v636_v19 }
 0x15e   :  { %v1282_v1 = vpop.eup %1281  ;;  %1293 = vtanh.f32 %v633_v20 }
 0x15f   :  { %795 = vmatpush.msrb.mxu3 %v1276_v42  ;;  %v1284_v43 = vpop.eup %1283  ;;  %1295 = vtanh.f32 %v630_v50 }
 0x160   :  { %782 = vmatmul.f32.gmra.mxu2 %v2018_v63  ;;  %v1286_v29 = vpop.eup %1285  ;;  %1297 = vtanh.f32 %v627_v58 }
 0x161   :  { %796 = vmatpush.msrb.mxu3 %v1278_v38  ;;  %v1288_v52 = vpop.eup %1287  ;;  %1299 = vtanh.f32 %v624_v39  ;;  %v2096_v31 = vpop.permute.xlu0 %722 }
 0x162   :  { %v1290_v2 = vpop.eup %1289  ;;  %1301 = vtanh.f32 %v621_v27 }
 0x163   :  { %797 = vmatpush.msrb.mxu3 %v1280_v24  ;;  %1303 = vtanh.f32 %v618_v13  ;;  %v2104_v24 = vpop.permute.xlu1 %732 }
 0x164   :  { %1305 = vtanh.f32 %v615_v33  ;;  %v152_v33 = vld [vmem:[%s2245_s1 + $0x10] sm:$0xff] }
 0x165   :  { %798 = vmatpush.msrb.mxu3 %v1282_v1  ;;  %1307 = vtanh.f32 %v612_v32 }
 0x167   :  { %799 = vmatpush.msrb.mxu3 %v1284_v43 }
 0x168   :  { %843 = vmatmul.f32.vlgmr.msra.gmra.mxu2 %v1914_v28  ;;  %v1292_v28 = vpop.eup %1291 }
 0x169   :  { %800 = vmatpush.msrb.mxu3 %v1286_v29  ;;  %v1294_v46 = vpop.eup %1293  ;;  %v708_v59 = vpop.permute.xlu0 %707 }
 0x16a   :  { %v1296_v6 = vpop.eup %1295 }
 0x16b   :  { %801 = vmatpush.msrb.mxu3 %v1288_v52  ;;  %v1298_v16 = vpop.eup %1297  ;;  %v2110_v29 = vpop.permute.xlu1 %717 }
 0x16c   :  { %802 = vmatmul.f32.vlgmr.msrb.gmra.mxu3 %v2036_v56  ;;  %v1300_v51 = vpop.eup %1299  ;;  %v2116_v52 = vpop.permute.xlu2 %712 }
 0x16d   :  { %868 = vmatpush.msra.mxu3 %v1290_v2  ;;  %v1302_v11 = vpop.eup %1301 }
 0x16e   :  { %v1304_v60 = vpop.eup %1303 }
 0x16f   :  { %869 = vmatpush.msra.mxu3 %v1292_v28 }
 0x170   :  { %846 = vmatmul.f32.gmra.mxu2 %v1934_v8  ;;  %v609_v8 = vadd.f32 %v1988_v61, %v1865_v17  ;;  %v1306_v17 = vpop.eup %1305  ;;  %v600_v61 = vadd.f32 %v1943_v25, %v1995_v4 }
 0x171   :  { %870 = vmatpush.msra.mxu3 %v1294_v46  ;;  %v1308_v54 = vpop.eup %1307 }
 0x172   :  { %1309 = vtanh.f32 %v609_v8 }
 0x173   :  { %871 = vmatpush.msra.mxu3 %v1296_v6  ;;  %1311 = vtanh.f32 %v606_v7  ;;  %v2123_v46 = vpop.permute.xlu1 %966 }
 0x174   :  { %805 = vmatmul.f32.gmra.mxu3 %v2050_v14  ;;  %1313 = vtanh.f32 %v603_v23  ;;  %v2126_v6 = vpop.permute.xlu2 %961 }
 0x175   :  { %872 = vmatpush.msra.mxu3 %v1298_v16  ;;  %1315 = vtanh.f32 %v600_v61 }
 0x177   :  { %873 = vmatpush.msra.mxu3 %v1300_v51  ;;  %v150_v51 = vld [vmem:[%s2245_s1] sm:$0xff] }
 0x178   :  { %849 = vmatmul.f32.gmra.mxu2 %v1952_v49  ;;  %v597_v49 = vadd.f32 %v1918_v0, %v2013_v15  ;;  %v1310_v40 = vpop.eup %1309 }
 0x179   :  { %874 = vmatpush.msra.mxu3 %v1302_v11  ;;  %v1312_v25 = vpop.eup %1311 }
 0x17a   :  { %1317 = vtanh.f32 %v597_v49  ;;  %v1314_v26 = vpop.eup %1313 }
 0x17b   :  { %875 = vmatpush.msra.mxu3 %v1304_v60  ;;  %1319 = vtanh.f32 %v594_v12  ;;  %v1316_v0 = vpop.eup %1315  ;;  %v154_v60 = vld [vmem:[%s2245_s1 + $0x20] sm:$0xff] }
 0x17c   :  { %808 = vmatmul.f32.gmra.mxu3 %v102_v57 }
 0x17d   :  { %876 = vmatpush.msra.mxu3 %v1306_v17 }
 0x17f   :  { %877 = vmatpush.msra.mxu3 %v1308_v54 }
 0x180   :  { %852 = vmatmul.f32.gmra.mxu2 %v1970_v34  ;;  %v1318_v4 = vpop.eup %1317 }
 0x181   :  { %878 = vmatpush.msra.mxu3 %v1310_v40  ;;  %v1320_v34 = vpop.eup %1319  ;;  %v2142_v40 = vpop.permute.xlu0 %994 }
 0x183   :  { %879 = vmatpush.msra.mxu3 %v1312_v25 }
 0x184   :  { %811 = vmatmul.f32.gmra.mxu3 %v104_v10 }
 0x185   :  { %880 = vmatpush.msra.mxu3 %v1314_v26 }
 0x187   :  { %881 = vmatpush.msra.mxu3 %v1316_v0  ;;  %v2144_v0 = vpop.permute.xlu1 %956 }
 0x188   :  { %855 = vmatmul.f32.gmra.mxu2 %v1980_v47  ;;  %v110_v47 = vld [vmem:[%s2248_s4 + $0x68] sm:$0xff] }
 0x189   :  { %882 = vmatpush.msra.mxu3 %v1318_v4 }
 0x18b   :  { %883 = vmatpush.msra.mxu3 %v1320_v34  ;;  %v2146_v34 = vpop.permute.xlu2 %989 }
 0x18c   :  { %814 = vmatmul.f32.gmra.mxu3 %v106_v18 }
 0x190   :  { %858 = vmatmul.f32.gmra.mxu2 %v1986_v44 }
 0x194   :  { %817 = vmatmul.f32.gmra.mxu3 %v108_v9 }
 0x198   :  { %861 = vmatmul.f32.gmra.mxu2 %v2000_v62 }
 0x19c   :  { %820 = vmatmul.f32.gmra.mxu3 %v110_v47 }
 0x1a0   :  { %864 = vmatmul.f32.gmra.mxu2 %v2018_v63 }
 0x1a4   :  { %823 = vmatmul.f32.gmra.mxu3 %v112_v37 }
 0x1ab   :  { %v762_v44 = vpop.f32.mrf.mxu2 }
 0x1ac   :  { %884 = vmatmul.f32.vlgmr.msra.gmra.mxu3 %v2036_v56  ;;  %v763_v45 = vadd.f32 %v762_v44, %v708_v59  ;;  %v1338_v44 = vld [vmem:[%s2244_s0 + $0x20] sm:$0xff] }
 0x1b3   :  { %v765_v62 = vpop.f32.mrf.mxu2 }
 0x1b4   :  { %887 = vmatmul.f32.gmra.mxu3 %v2050_v14  ;;  %v766_v8 = vadd.f32 %v765_v62, %v2116_v52 }
 0x1bb   :  { %v768_v55 = vpop.f32.mrf.mxu2 }
 0x1bc   :  { %890 = vmatmul.f32.gmra.mxu3 %v102_v57  ;;  %v769_v17 = vadd.f32 %v768_v55, %v2110_v29 }
 0x1c3   :  { %v2098_v36 = vpop.f32.mrf.mxu2 }
 0x1c4   :  { %893 = vmatmul.f32.gmra.mxu3 %v104_v10 }
 0x1cb   :  { %v774_v63 = vpop.f32.mrf.mxu2 }
 0x1cc   :  { %896 = vmatmul.f32.gmra.mxu3 %v106_v18  ;;  %v775_v19 = vadd.f32 %v774_v63, %v2106_v30  ;;  %v1339_v63 = vld [vmem:[%s2244_s0] sm:$0xff] }
 0x1d3   :  { %v777_v21 = vpop.f32.mrf.mxu2 }
 0x1d4   :  { %899 = vmatmul.f32.gmra.mxu3 %v108_v9  ;;  %v778_v43 = vadd.f32 %v777_v21, %v2104_v24 }
 0x1db   :  { %v780_v48 = vpop.f32.mrf.mxu2 }
 0x1dc   :  { %902 = vmatmul.f32.gmra.mxu3 %v110_v47  ;;  %v781_v3 = vadd.f32 %v780_v48, %v2094_v41  ;;  %v1337_v47 = vld [vmem:[%s2244_s0 + $0x10] sm:$0xff] }
 0x1e3   :  { %v783_v1 = vpop.f32.mrf.mxu2 }
 0x1e4   :  { %905 = vmatmul.f32.gmra.mxu3 %v112_v37  ;;  %v784_v32 = vadd.f32 %v783_v1, %v2100_v53 }
 0x1eb   :  { %v844_v39 = vpop.f32.mrf.mxu2 }
 0x1ec   :  { %v845_v9 = vadd.f32 %v844_v39, %v708_v59  ;;  %v772_v59 = vadd.f32 %v2098_v36, %v2096_v31  ;;  %v1340_v39 = vld [vmem:[%s2244_s0 + $0x30] sm:$0xff] }
 0x1ef   :  { %v803_v5 = vpop.f32.mrf.mxu3 }
 0x1f0   :  { %v804_v15 = vadd.f32 %v803_v5, %v763_v45  ;;  %v156_v45 = vld [vmem:[%s2245_s1 + $0x30] sm:$0xff] }
 0x1f3   :  { %v2136_v11 = vpop.f32.mrf.mxu2 }
 0x1f7   :  { %v806_v42 = vpop.f32.mrf.mxu3 }
 0x1f8   :  { %v807_v61 = vadd.f32 %v806_v42, %v766_v8 }
 0x1ff   :  { %v809_v22 = vpop.f32.mrf.mxu3 }
 0x200   :  { %v810_v10 = vadd.f32 %v809_v22, %v769_v17 }
 0x207   :  { %v2102_v38 = vpop.f32.mrf.mxu3 }
 0x208   :  { %v813_v48 = vadd.f32 %v2102_v38, %v772_v59 }
 0x20f   :  { %v815_v35 = vpop.f32.mrf.mxu3 }
 0x210   :  { %v2112_v50 = vadd.f32 %v815_v35, %v775_v19  ;;  %v2169_v19 = vpop.permute.xlu0 %951 }
 0x212   :  { %v909_v2 = vmul.f32 1.442695, %v2112_v50 }
 0x217   :  { %v818_v20 = vpop.f32.mrf.mxu3 }
 0x218   :  { %v2114_v56 = vadd.f32 %v818_v20, %v778_v43 }
 0x21a   :  { %v913_v58 = vmul.f32 1.442695, %v2114_v56 }
 0x21c   :  { %1321 = vpow2.f32 %v913_v58  ;;  %v2173_v58 = vpop.permute.xlu1 %984 }
 0x21d   :  { %1323 = vpow2.f32 %v909_v2 }
 0x21f   :  { %v821_v28 = vpop.f32.mrf.mxu3 }
 0x220   :  { %v2121_v27 = vadd.f32 %v821_v28, %v781_v3  ;;  %v980_v28 = vpop.permute.xlu2 %979 }
 0x222   :  { %v917_v13 = vmul.f32 1.442695, %v2121_v27  ;;  %v1322_v14 = vpop.eup %1321 }
 0x223   :  { %v1324_v16 = vpop.eup %1323  ;;  %v927_v7 = vmul.f32 %v1322_v14, %v152_v33  ;;  %v1009_v14 = vmul.f32 %v154_v60, %v154_v60 }
 0x224   :  { %1325 = vpow2.f32 %v917_v13  ;;  %v925_v54 = vmul.f32 %v1324_v16, %v150_v51 }
 0x225   :  { %v935_v25 = vadd.f32 %v927_v7, %v807_v61  ;;  %v1007_v7 = vmul.f32 %v152_v33, %v152_v33  ;;  %v1011_v61 = vmul.f32 %v156_v45, %v156_v45 }
 0x226   :  { %v933_v4 = vadd.f32 %v925_v54, %v804_v15  ;;  %v2161_v15 = vpop.f32.mrf.mxu2  ;;  %v1005_v54 = vmul.f32 %v150_v51, %v150_v51 }
 0x227   :  { %v824_v57 = vpop.f32.mrf.mxu3  ;;  %v943_v37 = vadd.f32 %v1337_v47, %v935_v25 }
 0x228   :  { %v825_v23 = vadd.f32 %v824_v57, %v784_v32  ;;  %v941_v42 = vadd.f32 %v1339_v63, %v933_v4 }
 0x229   :  { %v971_v35 = vsub.f32 %v943_v37, %v2144_v0 }
 0x22a   :  { %v1326_v49 = vpop.eup %1325  ;;  %v921_v12 = vmul.f32 1.442695, %v825_v23  ;;  %v969_v43 = vsub.f32 %v941_v42, %v2169_v19 }
 0x22b   :  { %v929_v26 = vmul.f32 %v1326_v49, %v154_v60  ;;  %v999_v2 = vmul.f32 %v2173_v58, %v971_v35 }
 0x22c   :  { %1327 = vpow2.f32 %v921_v12  ;;  %v997_v13 = vmul.f32 %v980_v28, %v969_v43 }
 0x22d   :  { %v937_v18 = vadd.f32 %v929_v26, %v810_v10  ;;  %v1015_v57 = vmul.f32 %v999_v2, %v999_v2 }
 0x22e   :  { %v2180_v8 = vpop.f32.mrf.mxu2  ;;  %v1013_v49 = vmul.f32 %v997_v13, %v997_v13  ;;  %v848_v13 = vadd.f32 %v2136_v11, %v2116_v52  ;;  %v155_v52 = vld [vmem:[%s2245_s1 + $0x28] sm:$0xff] }
 0x22f   :  { %v945_v62 = vadd.f32 %v1338_v44, %v937_v18  ;;  %v885_v55 = vpop.f32.mrf.mxu3  ;;  %v1023_v25 = vsub.f32 %v1007_v7, %v1015_v57 }
 0x230   :  { %v2157_v5 = vadd.f32 %v885_v55, %v845_v9  ;;  %v1021_v18 = vsub.f32 %v1005_v54, %v1013_v49  ;;  %v1342_v54 = vld [vmem:[%s2244_s0 + $0x18] sm:$0xff] }
 0x231   :  { %v973_v21 = vsub.f32 %v945_v62, %v2126_v6  ;;  %v1031_v47 = vmul.f32 0.5, %v1023_v25 }
 0x232   :  { %v1328_v22 = vpop.eup %1327  ;;  %v1029_v62 = vmul.f32 0.5, %v1021_v18  ;;  %v121_v18 = vld [vmem:[%s2250_s6] sm:$0xff] }
 0x233   :  { %v931_v1 = vmul.f32 %v1328_v22, %v156_v45  ;;  %v1001_v36 = vmul.f32 %v2146_v34, %v973_v21  ;;  %v1039_v55 = vadd.f32 %v1031_v47, %v2114_v56  ;;  %v151_v56 = vld [vmem:[%s2245_s1 + $0x8] sm:$0xff] }
 0x234   :  { %v1037_v51 = vadd.f32 %v1029_v62, %v2112_v50 }
 0x235   :  { %v939_v20 = vadd.f32 %v931_v1, %v813_v48  ;;  %v1017_v16 = vmul.f32 %v1001_v36, %v1001_v36 }
 0x236   :  { %v856_v44 = vpop.f32.mrf.mxu2 }
 0x237   :  { %v947_v3 = vadd.f32 %v1340_v39, %v939_v20  ;;  %v888_v38 = vpop.f32.mrf.mxu3  ;;  %v1025_v12 = vsub.f32 %v1009_v14, %v1017_v16  ;;  %v857_v59 = vadd.f32 %v856_v44, %v2106_v30  ;;  %v153_v39 = vld [vmem:[%s2245_s1 + $0x18] sm:$0xff] }
 0x239   :  { %v975_v32 = vsub.f32 %v947_v3, %v2123_v46  ;;  %v1033_v9 = vmul.f32 0.5, %v1025_v12 }
 0x23b   :  { %v1003_v17 = vmul.f32 %v2142_v40, %v975_v32  ;;  %v1041_v33 = vadd.f32 %v1033_v9, %v2121_v27 }
 0x23d   :  { %v1019_v10 = vmul.f32 %v1003_v17, %v1003_v17 }
 0x23e   :  { %v859_v63 = vpop.f32.mrf.mxu2 }
 0x23f   :  { %v1027_v26 = vsub.f32 %v1011_v61, %v1019_v10  ;;  %v891_v4 = vpop.f32.mrf.mxu3  ;;  %v860_v27 = vadd.f32 %v859_v63, %v2104_v24  ;;  %v1341_v24 = vld [vmem:[%s2244_s0 + $0x8] sm:$0xff] }
 0x241   :  { %v1035_v60 = vmul.f32 0.5, %v1027_v26 }
 0x243   :  { %v1043_v37 = vadd.f32 %v1035_v60, %v825_v23 }
 0x245   :  { %1060 = vmatpush.msrb.mxu2 %v1043_v37 }
 0x246   :  { %v862_v50 = vpop.f32.mrf.mxu2 }
 0x247   :  { %v894_v45 = vpop.f32.mrf.mxu3  ;;  %1061 = vmatpush.msrb.mxu2 %v1041_v33  ;;  %v863_v36 = vadd.f32 %v862_v50, %v2094_v41  ;;  %v889_v41 = vadd.f32 %v888_v38, %v848_v13  ;;  %v1344_v33 = vld [vmem:[%s2244_s0 + $0x38] sm:$0xff] }
 0x249   :  { %1062 = vmatpush.msrb.mxu2 %v1039_v55 }
 0x24b   :  { %1063 = vmatpush.msrb.mxu2 %v1037_v51  ;;  %v1010_v51 = vmul.f32 %v155_v52, %v155_v52 }
 0x24c   :  { %1170 = vmatmul.msk.f32.vlgmr.msrb.gmra.mxu2 %vm318_vm0, %v121_v18 }
 0x24e   :  { %v865_v32 = vpop.f32.mrf.mxu2 }
 0x24f   :  { %v897_v42 = vpop.f32.mrf.mxu3  ;;  %v866_v61 = vadd.f32 %v865_v32, %v2100_v53 }
 0x250   :  { %v2187_v21 = vadd.f32 %v897_v42, %v857_v59  ;;  %v1008_v42 = vmul.f32 %v153_v39, %v153_v39 }
 0x252   :  { %v911_v23 = vmul.f32 1.442695, %v2187_v21 }
 0x254   :  { %1329 = vpow2.f32 %v911_v23 }
 0x257   :  { %v900_v22 = vpop.f32.mrf.mxu3 }
 0x258   :  { %v2194_v48 = vadd.f32 %v900_v22, %v860_v27 }
 0x25a   :  { %v1330_v35 = vpop.eup %1329  ;;  %v915_v30 = vmul.f32 1.442695, %v2194_v48 }
 0x25b   :  { %v926_v1 = vmul.f32 %v1330_v35, %v151_v56 }
 0x25c   :  { %1331 = vpow2.f32 %v915_v30 }
 0x25d   :  { %v934_v43 = vadd.f32 %v926_v1, %v2157_v5 }
 0x25f   :  { %v942_v20 = vadd.f32 %v1341_v24, %v934_v43  ;;  %v903_v2 = vpop.f32.mrf.mxu3 }
 0x260   :  { %v904_v3 = vadd.f32 %v903_v2, %v863_v36 }
 0x261   :  { %v970_v14 = vsub.f32 %v942_v20, %v2169_v19  ;;  %v851_v19 = vadd.f32 %v2161_v15, %v2110_v29  ;;  %v1343_v29 = vld [vmem:[%s2244_s0 + $0x28] sm:$0xff]  ;;  %s1372_s0 = smov [#allocation2]  }
 0x262   :  { %v1332_v16 = vpop.eup %1331  ;;  %v919_v5 = vmul.f32 1.442695, %v904_v3 }
 0x263   :  { %v998_v7 = vmul.f32 %v980_v28, %v970_v14  ;;  %v928_v57 = vmul.f32 %v1332_v16, %v153_v39  ;;  %v892_v25 = vadd.f32 %v891_v4, %v851_v19 }
 0x264   :  { %1333 = vpow2.f32 %v919_v5 }
 0x265   :  { %v936_v17 = vadd.f32 %v928_v57, %v889_v41 }
 0x267   :  { %v944_v49 = vadd.f32 %v1342_v54, %v936_v17  ;;  %v906_v12 = vpop.f32.mrf.mxu3 }
 0x268   :  { %v907_v11 = vadd.f32 %v906_v12, %v866_v61 }
 0x269   :  { %v972_v38 = vsub.f32 %v944_v49, %v2144_v0  ;;  %v157_v0 = vld [vmem:[%s2245_s1 + $0x38] sm:$0xff]  ;;  %s1095_s1 = sshll.u32 %s1372_s0, 4  ;;  %s1096_s1 = int_to_ptr.vmem [resolvable:$true] %s1095_s1 }
 0x26a   :  { %v1334_v28 = vpop.eup %1333  ;;  %v923_v10 = vmul.f32 1.442695, %v907_v11 }
 0x26b   :  { %v1000_v53 = vmul.f32 %v2173_v58, %v972_v38  ;;  %v930_v26 = vmul.f32 %v1334_v28, %v155_v52  ;;  %v854_v58 = vadd.f32 %v2180_v8, %v2096_v31  ;;  %v1006_v8 = vmul.f32 %v151_v56, %v151_v56 }
 0x26c   :  { %1335 = vpow2.f32 %v923_v10 }
 0x26d   :  { %v938_v9 = vadd.f32 %v930_v26, %v892_v25  ;;  %v895_v47 = vadd.f32 %v894_v45, %v854_v58  ;;  %v1016_v23 = vmul.f32 %v1000_v53, %v1000_v53  ;;  %v1014_v45 = vmul.f32 %v998_v7, %v998_v7 }
 0x26f   :  { %v946_v15 = vadd.f32 %v1343_v29, %v938_v9  ;;  %v1022_v35 = vsub.f32 %v1006_v8, %v1014_v45 }
 0x271   :  { %v974_v4 = vsub.f32 %v946_v15, %v2126_v6  ;;  %v1012_v6 = vmul.f32 %v157_v0, %v157_v0  ;;  %v1030_v24 = vmul.f32 0.5, %v1022_v35 }
 0x272   :  { %v1336_v60 = vpop.eup %1335 }
 0x273   :  { %v932_v37 = vmul.f32 %v1336_v60, %v157_v0  ;;  %v1002_v44 = vmul.f32 %v2146_v34, %v974_v4  ;;  %v1024_v34 = vsub.f32 %v1008_v42, %v1016_v23 }
 0x275   :  { %v940_v62 = vadd.f32 %v932_v37, %v895_v47  ;;  %v1018_v59 = vmul.f32 %v1002_v44, %v1002_v44  ;;  %v1032_v43 = vmul.f32 0.5, %v1024_v34 }
 0x277   :  { %v948_v55 = vadd.f32 %v1344_v33, %v940_v62  ;;  %v1026_v27 = vsub.f32 %v1010_v51, %v1018_v59 }
 0x279   :  { %v976_v63 = vsub.f32 %v948_v55, %v2123_v46  ;;  %v1034_v30 = vmul.f32 0.5, %v1026_v27  ;;  %v1040_v46 = vadd.f32 %v1032_v43, %v2194_v48 }
 0x27b   :  { %v1004_v31 = vmul.f32 %v2142_v40, %v976_v63  ;;  %v1042_v20 = vadd.f32 %v1034_v30, %v904_v3  ;;  %v1038_v40 = vadd.f32 %v1030_v24, %v2187_v21 }
 0x27d   :  { %v1020_v22 = vmul.f32 %v1004_v31, %v1004_v31 }
 0x27f   :  { %v1028_v50 = vsub.f32 %v1012_v6, %v1020_v22 }
 0x281   :  { %v1036_v1 = vmul.f32 0.5, %v1028_v50 }
 0x283   :  { %v1044_v36 = vadd.f32 %v1036_v1, %v907_v11 }
 0x285   :  { %1080 = vmatpush.msrb.mxu3 %v1044_v36 }
 0x287   :  { %1081 = vmatpush.msrb.mxu3 %v1042_v20 }
 0x289   :  { %1082 = vmatpush.msrb.mxu3 %v1040_v46 }
 0x28b   :  { %1083 = vmatpush.msrb.mxu3 %v1038_v40 }
 0x28c   :  { %1171 = vmatmul.msk.f32.vlgmr.msrb.gmra.mxu3 %vm318_vm0, %v121_v18 }
 0x2cf   :  { %v1065_v56 = vpop.f32.mrf.mxu2 }
 0x30f   :  { %v1085_v2 = vpop.f32.mrf.mxu3 }
 0x310   :  { %v1088_v39 = vadd.f32 %v1085_v2, %v1065_v56 }
 0x312   :  { %1089 = vst [vmem:[#allocation2] sm:$0xff] %v1088_v39 }
 0x313   :  { %1100 = dma.vmem_to_hbm [thread:$0]  %s1096_s1, 128, %s1098_s20, [#allocation3]  }
 0x314   :  { %1369 = dma.done.wait [#allocation3], 128  }
 0x315   :  { %1370 = vsyncadd [#allocation3], 4294967168 }
 0x316   :  { %1105 = vsyncpa [#allocation3], 1 }

</bundles_post_ra>
